<compile_context>
chip_gen: v6e
topology: v6e:2x2x1
jax: 0.10.0
libtpu: 0.0.40
codegen_flags: <defaults>
</compile_context>

<pallas_src>
import functools

import jax
import jax.numpy as jnp
import numpy as np
from jax.experimental import pallas as pl
from jax.experimental.pallas import tpu as pltpu


# ----------------------------------------------------------------------------
# Pallas kernel: fused 1x1-conv heads + YOLOv5 box decode for one level.
# All tiles are channels-on-sublane / spatial-on-lane.
# ----------------------------------------------------------------------------
def det_pred_kernel(xc_ref, xr_ref, w_or_ref, b_or_ref, w_cls_ref, b_cls_ref,
                    axy_ref, awh_ref,
                    obj_ref, cls_ref, regp_ref, boxp_ref,
                    *, num_anchors: int, stride: float):
    A = num_anchors
    A2 = 2 * A
    A4 = 4 * A

    xc = xc_ref[0]                                   # (Cc, TM)
    xr = xr_ref[0]                                   # (Cr, TM)

    # Fused obj+reg head (shared LHS).  Row layout: [reg (permuted, 4A) | obj (A)].
    orr = jnp.dot(w_or_ref[...], xr,
                  preferred_element_type=jnp.float32) + b_or_ref[...]
    reg_p = orr[:A4, :]                              # (4A, TM)  [txy rows | twh rows]
    obj = orr[A4:, :]                                # (A , TM)

    cls = jnp.dot(w_cls_ref[...], xc,
                  preferred_element_type=jnp.float32) + b_cls_ref[...]

    obj_ref[0] = obj
    cls_ref[0] = cls
    regp_ref[0] = reg_p

    # Box decode: whole-tile vector math (sigmoid/exp on EUP, add/mul on VPU),
    # anchors pre-folded so cxcy = sigmoid(t)*(2*stride) + (axy-0.5)*stride.
    txy = reg_p[:A2, :]                              # (2A, TM)
    twh = reg_p[A2:, :]                              # (2A, TM)
    cxcy = jax.nn.sigmoid(txy) * (2.0 * stride) + axy_ref[...]
    half = 0.5 * (jnp.exp(twh) * awh_ref[...])
    boxp_ref[0] = jnp.concatenate([cxcy - half, cxcy + half], axis=0)   # (4A, TM)


# ----------------------------------------------------------------------------
# Wrapper helpers
# ----------------------------------------------------------------------------
def generate_anchors(H, W, anchor_size):
    """(H*W*A, 4) anchors [x, y, w, h], matching DetPredLayer.generate_anchors."""
    A = anchor_size.shape[0]
    ys, xs = jnp.meshgrid(jnp.arange(H), jnp.arange(W), indexing="ij")
    axy = jnp.stack([xs, ys], axis=-1).astype(jnp.float32).reshape(-1, 2)
    axy = jnp.repeat(axy, A, axis=0)
    awh = jnp.tile(anchor_size.astype(jnp.float32), (H * W, 1))
    return jnp.concatenate([axy, awh], axis=-1)


def _build_anchor_planes(H, W, anchor_size, stride):
    """axy: (2A, H*W) folded xy offsets, awh: (2A, 1) per-anchor wh."""
    A = anchor_size.shape[0]
    ys, xs = jnp.meshgrid(jnp.arange(H, dtype=jnp.float32),
                          jnp.arange(W, dtype=jnp.float32), indexing="ij")
    x_row = (xs.reshape(-1) - 0.5) * stride          # (HW,)
    y_row = (ys.reshape(-1) - 0.5) * stride
    axy = jnp.tile(jnp.stack([x_row, y_row], axis=0), (A, 1))   # (2A, HW)
    awh = anchor_size.astype(jnp.float32).reshape(2 * A, 1)      # (2A, 1)
    return axy, awh


def _reg_row_perm(A):
    """New-row -> old-row indices: reorder reg head channels from
    [a*4 + {x,y,w,h}] to [all (a,x),(a,y) | all (a,w),(a,h)]."""
    xy = [a * 4 + c for a in range(A) for c in (0, 1)]
    wh = [a * 4 + c for a in range(A) for c in (2, 3)]
    return np.array(xy + wh, dtype=np.int32)


def _pick_tile(hw, batch, max_tm=2048):
    """Largest lane tile that is either the full spatial extent or a multiple
    of 128 dividing it; keep >=2 grid steps when batch==1 (dual-TC chips)."""
    cands = [t for t in range(128, max_tm + 1, 128) if hw % t == 0]
    if not cands:
        return hw
    tm = cands[-1]
    if batch == 1 and hw // tm < 2 and len(cands) > 1:
        tm = cands[-2]
    return tm


# ----------------------------------------------------------------------------
# Per-level wrapper
# ----------------------------------------------------------------------------
def det_pred_level(cls_feat, reg_feat, params, anchor_size, stride, num_classes):
    """cls_feat, reg_feat: NCHW float32. Returns dict matching DetPredLayer.forward."""
    B, Cc, H, W = cls_feat.shape
    _, Cr, _, _ = reg_feat.shape
    A = int(anchor_size.shape[0])
    NC = num_classes
    HW = H * W
    A2, A4 = 2 * A, 4 * A

    # NCHW -> (B, C, H*W): zero-cost reshape; channels on sublanes, space on lanes.
    xc = cls_feat.reshape(B, Cc, HW)
    xr = reg_feat.reshape(B, Cr, HW)

    # Permute reg-head rows into [txy | twh] halves, fuse with the obj head.
    perm = _reg_row_perm(A)
    w_or = jnp.concatenate([params["w_reg"][perm], params["w_obj"]], axis=0)  # (4A+A, Cr)
    b_or = jnp.concatenate([params["b_reg"][perm], params["b_obj"]], axis=0)  # (4A+A, 1)
    w_cls, b_cls = params["w_cls"], params["b_cls"]                           # (A*NC, Cc), (A*NC, 1)

    axy, awh = _build_anchor_planes(H, W, anchor_size, float(stride))

    TM = _pick_tile(HW, B)
    n_tiles = HW // TM

    kernel = functools.partial(det_pred_kernel, num_anchors=A, stride=float(stride))

    feat_spec = lambda C: pl.BlockSpec((1, C, TM), lambda i, b: (b, 0, i))
    out_spec = lambda C: pl.BlockSpec((1, C, TM), lambda i, b: (b, 0, i))
    full_spec = lambda r, c: pl.BlockSpec((r, c), lambda i, b: (0, 0))

    obj, cls, regp, boxp = pl.pallas_call(
        kernel,
        out_shape=(
            jax.ShapeDtypeStruct((B, A, HW), jnp.float32),
            jax.ShapeDtypeStruct((B, A * NC, HW), jnp.float32),
            jax.ShapeDtypeStruct((B, A4, HW), jnp.float32),
            jax.ShapeDtypeStruct((B, A4, HW), jnp.float32),
        ),
        grid_spec=pltpu.PrefetchScalarGridSpec(
            num_scalar_prefetch=0,
            grid=(n_tiles, B),
            in_specs=[
                feat_spec(Cc),                                  # x_cls
                feat_spec(Cr),                                  # x_reg
                full_spec(A4 + A, Cr),                          # fused reg|obj weight
                full_spec(A4 + A, 1),                           # fused reg|obj bias
                full_spec(A * NC, Cc),                          # cls weight
                full_spec(A * NC, 1),                           # cls bias
                pl.BlockSpec((A2, TM), lambda i, b: (0, i)),    # folded xy anchors (batch-indep.)
                full_spec(A2, 1),                               # anchor wh
            ],
            out_specs=[out_spec(A), out_spec(A * NC), out_spec(A4), out_spec(A4)],
        ),
        compiler_params=pltpu.CompilerParams(
            dimension_semantics=("parallel", "parallel")),
    )(xc, xr, w_or, b_or, w_cls, b_cls, axy, awh)

    # Glue: back to the torch output layout (B, H*W*A, k).  Only the small
    # (<=39-channel) outputs are transposed, never the 64-channel inputs.
    def rows(t, k):                                   # unpermuted channels
        return jnp.transpose(t, (0, 2, 1)).reshape(B, HW * A, k)

    def rows_from_halves(t):                          # [xy/x1y1 half | wh/x2y2 half]
        u = jnp.transpose(t, (0, 2, 1)).reshape(B, HW, 2, A, 2)
        return jnp.transpose(u, (0, 1, 3, 2, 4)).reshape(B, HW * A, 4)

    return {
        "pred_obj": rows(obj, 1),
        "pred_cls": rows(cls, NC),
        "pred_reg": rows_from_halves(regp),
        "pred_box": rows_from_halves(boxp),
        "anchors": generate_anchors(H, W, anchor_size),
        "fmp_size": [H, W],
        "stride": stride,
    }


# ----------------------------------------------------------------------------
# Multi-level module (Yolov5DetPredLayer)
# ----------------------------------------------------------------------------
class Cfg:
    head_dim = 64
    width = 0.5
    num_classes = 4
    num_levels = 3
    out_stride = [8, 16, 32]
    anchor_size = [
        [[10, 13], [16, 30], [33, 23]],
        [[30, 61], [62, 45], [59, 119]],
        [[116, 90], [156, 198], [373, 326]],
    ]


def init_level_params(key, cls_dim, reg_dim, num_anchors, num_classes):
    """Follows DetPredLayer.init_bias (obj/cls bias = -log((1-p)/p), reg bias ~ 1);
    a small random perturbation is added to the (zero-initialised) reg head so
    the decode / channel-permutation path is actually exercised by the check."""
    A, NC = num_anchors, num_classes
    k1, k2, k3, k4 = jax.random.split(key, 4)
    bias_value = float(-jnp.log(jnp.asarray((1.0 - 0.01) / 0.01, jnp.float32)))
    return {
        # conv weights kept in PyTorch (out_ch, in_ch) layout
        "w_obj": 0.05 * jax.random.normal(k1, (A, reg_dim), jnp.float32),
        "b_obj": jnp.full((A, 1), bias_value, jnp.float32),
        "w_cls": 0.05 * jax.random.normal(k2, (A * NC, cls_dim), jnp.float32),
        "b_cls": jnp.full((A * NC, 1), bias_value, jnp.float32),
        "w_reg": 0.01 * jax.random.normal(k3, (A * 4, reg_dim), jnp.float32),
        "b_reg": 1.0 + 0.1 * jax.random.normal(k4, (A * 4, 1), jnp.float32),
    }


def yolov5_det_pred_layer(cfg, level_params, cls_feats, reg_feats):
    all_out = {"pred_obj": [], "pred_cls": [], "pred_reg": [], "pred_box": [],
               "fmp_sizes": [], "anchors": [], "strides": cfg.out_stride}
    for level in range(cfg.num_levels):
        anchor_size = jnp.asarray(cfg.anchor_size[level], jnp.float32).reshape(-1, 2)
        out = det_pred_level(cls_feats[level], reg_feats[level],
                             level_params[level], anchor_size,
                             cfg.out_stride[level], cfg.num_classes)
        all_out["pred_obj"].append(out["pred_obj"])
        all_out["pred_cls"].append(out["pred_cls"])
        all_out["pred_reg"].append(out["pred_reg"])
        all_out["pred_box"].append(out["pred_box"])
        all_out["fmp_sizes"].append(out["fmp_size"])
        all_out["anchors"].append(out["anchors"])
    return all_out


# ----------------------------------------------------------------------------
# Pure-JAX reference (correctness check)
# ----------------------------------------------------------------------------
def ref_level(cls_feat, reg_feat, params, anchor_size, stride, num_classes):
    B, Cc, H, W = cls_feat.shape
    A, NC = int(anchor_size.shape[0]), num_classes
    M = B * H * W
    xc = jnp.transpose(cls_feat, (0, 2, 3, 1)).reshape(M, Cc)
    xr = jnp.transpose(reg_feat, (0, 2, 3, 1)).reshape(M, -1)
    obj = (xr @ params["w_obj"].T + params["b_obj"].T).reshape(B, H * W * A, 1)
    cls = (xc @ params["w_cls"].T + params["b_cls"].T).reshape(B, H * W * A, NC)
    reg = (xr @ params["w_reg"].T + params["b_reg"].T).reshape(B, H * W * A, 4)
    anchors = generate_anchors(H, W, anchor_size)
    cxcy = (jax.nn.sigmoid(reg[..., :2]) * 2.0 - 0.5 + anchors[..., :2]) * stride
    bwbh = jnp.exp(reg[..., 2:]) * anchors[..., 2:]
    box = jnp.concatenate([cxcy - 0.5 * bwbh, cxcy + 0.5 * bwbh], axis=-1)
    return obj, cls, reg, box


# ----------------------------------------------------------------------------
if __name__ == "__main__":
    cfg = Cfg()
    cls_dim = reg_dim = round(cfg.head_dim * cfg.width)   # 32
    B = 2
    spatial = [16, 8, 4]                                   # H = W per level

    key = jax.random.PRNGKey(0)
    keys = jax.random.split(key, 3 * cfg.num_levels)

    level_params = [
        init_level_params(keys[l], cls_dim, reg_dim,
                          num_anchors=len(cfg.anchor_size[l]),
                          num_classes=cfg.num_classes)
        for l in range(cfg.num_levels)
    ]

    cls_feats, reg_feats = [], []
    for l in range(cfg.num_levels):
        H = W = spatial[l]
        cls_feats.append(jax.random.normal(keys[cfg.num_levels + l],
                                           (B, cls_dim, H, W), jnp.float32))
        reg_feats.append(jax.random.normal(keys[2 * cfg.num_levels + l],
                                           (B, reg_dim, H, W), jnp.float32) + 0.1 * l)

    outputs = yolov5_det_pred_layer(cfg, level_params, cls_feats, reg_feats)
    jax.block_until_ready(outputs["pred_box"][-1])

    # correctness check vs pure-JAX reference
    for l in range(cfg.num_levels):
        anchor_size = jnp.asarray(cfg.anchor_size[l], jnp.float32).reshape(-1, 2)
        r_obj, r_cls, r_reg, r_box = ref_level(cls_feats[l], reg_feats[l],
                                               level_params[l], anchor_size,
                                               cfg.out_stride[l], cfg.num_classes)
        assert jnp.allclose(outputs["pred_obj"][l], r_obj, rtol=1e-3, atol=2e-3)
        assert jnp.allclose(outputs["pred_cls"][l], r_cls, rtol=1e-3, atol=2e-3)
        assert jnp.allclose(outputs["pred_reg"][l], r_reg, rtol=1e-3, atol=3e-3)
        # box values reach O(1e3) (anchor wh * exp); allow slack for MXU-vs-XLA
        # matmul precision differences amplified through exp().
        assert jnp.allclose(outputs["pred_box"][l], r_box, rtol=5e-3, atol=5e-2)

    print("KERNEL_OK")
</pallas_src>

<mosaic_0001>
module attributes {stable_mosaic.version = 11 : i64} {
  func.func @det_pred_kernel(%arg0: i32, %arg1: i32, %arg2: memref<1x32x256xf32, #tpu.memory_space<vmem>>, %arg3: memref<1x32x256xf32, #tpu.memory_space<vmem>>, %arg4: memref<15x32xf32, #tpu.memory_space<vmem>>, %arg5: memref<15x1xf32, #tpu.memory_space<vmem>>, %arg6: memref<12x32xf32, #tpu.memory_space<vmem>>, %arg7: memref<12x1xf32, #tpu.memory_space<vmem>>, %arg8: memref<6x256xf32, #tpu.memory_space<vmem>>, %arg9: memref<6x1xf32, #tpu.memory_space<vmem>>, %arg10: memref<1x3x256xf32, #tpu.memory_space<vmem>>, %arg11: memref<1x12x256xf32, #tpu.memory_space<vmem>>, %arg12: memref<1x12x256xf32, #tpu.memory_space<vmem>>, %arg13: memref<1x12x256xf32, #tpu.memory_space<vmem>>) attributes {dimension_semantics = [#tpu.dimension_semantics<parallel>, #tpu.dimension_semantics<parallel>], iteration_bounds = array<i64: 1, 2>, scalar_prefetch = 0 : i64, scratch_operands = 0 : i64, tpu.core_type = #tpu.core_type<tc>, window_params = [{transform_indices = @transform_0, window_bounds = array<i64: 1, 32, 256>}, {transform_indices = @transform_1, window_bounds = array<i64: 1, 32, 256>}, {pipeline_mode = #tpu.pipeline_mode<synchronous>, transform_indices = @transform_2, window_bounds = array<i64: 15, 32>}, {pipeline_mode = #tpu.pipeline_mode<synchronous>, transform_indices = @transform_3, window_bounds = array<i64: 15, 1>}, {pipeline_mode = #tpu.pipeline_mode<synchronous>, transform_indices = @transform_4, window_bounds = array<i64: 12, 32>}, {pipeline_mode = #tpu.pipeline_mode<synchronous>, transform_indices = @transform_5, window_bounds = array<i64: 12, 1>}, {transform_indices = @transform_6, window_bounds = array<i64: 6, 256>}, {pipeline_mode = #tpu.pipeline_mode<synchronous>, transform_indices = @transform_7, window_bounds = array<i64: 6, 1>}, {transform_indices = @transform_8, window_bounds = array<i64: 1, 3, 256>}, {transform_indices = @transform_9, window_bounds = array<i64: 1, 12, 256>}, {transform_indices = @transform_10, window_bounds = array<i64: 1, 12, 256>}, {transform_indices = @transform_11, window_bounds = array<i64: 1, 12, 256>}]} {
    %c0 = arith.constant 0 : index
    %c0_0 = arith.constant 0 : index
    %c0_1 = arith.constant 0 : index
    %0 = vector.load %arg2[%c0, %c0_0, %c0_1] : memref<1x32x256xf32, #tpu.memory_space<vmem>>, vector<1x32x256xf32>
    %1 = vector.shape_cast %0 : vector<1x32x256xf32> to vector<32x256xf32>
    %c0_2 = arith.constant 0 : index
    %c0_3 = arith.constant 0 : index
    %c0_4 = arith.constant 0 : index
    %2 = vector.load %arg3[%c0_2, %c0_3, %c0_4] : memref<1x32x256xf32, #tpu.memory_space<vmem>>, vector<1x32x256xf32>
    %3 = vector.shape_cast %2 : vector<1x32x256xf32> to vector<32x256xf32>
    %c0_5 = arith.constant 0 : index
    %c0_6 = arith.constant 0 : index
    %4 = vector.load %arg4[%c0_5, %c0_6] : memref<15x32xf32, #tpu.memory_space<vmem>>, vector<15x32xf32>
    %cst = arith.constant dense<0.000000e+00> : vector<15x256xf32>
    %5 = tpu.matmul %4, %3, %cst {dimension_numbers = #tpu.dot_dimension_numbers<[1], [0], [0], [1], [0, 0, 1, 1], [], []>} : vector<15x32xf32>, vector<32x256xf32>, vector<15x256xf32> -> vector<15x256xf32>
    %c0_7 = arith.constant 0 : index
    %c0_8 = arith.constant 0 : index
    %6 = vector.load %arg5[%c0_7, %c0_8] : memref<15x1xf32, #tpu.memory_space<vmem>>, vector<15x1xf32>
    %7 = vector.broadcast %6 : vector<15x1xf32> to vector<15x256xf32>
    %8 = arith.addf %5, %7 : vector<15x256xf32>
    %9 = vector.extract_strided_slice %8 {offsets = [0, 0], sizes = [12, 256], strides = [1, 1]} : vector<15x256xf32> to vector<12x256xf32>
    %10 = vector.extract_strided_slice %8 {offsets = [12, 0], sizes = [3, 256], strides = [1, 1]} : vector<15x256xf32> to vector<3x256xf32>
    %c0_9 = arith.constant 0 : index
    %c0_10 = arith.constant 0 : index
    %11 = vector.load %arg6[%c0_9, %c0_10] : memref<12x32xf32, #tpu.memory_space<vmem>>, vector<12x32xf32>
    %cst_11 = arith.constant dense<0.000000e+00> : vector<12x256xf32>
    %12 = tpu.matmul %11, %1, %cst_11 {dimension_numbers = #tpu.dot_dimension_numbers<[1], [0], [0], [1], [0, 0, 1, 1], [], []>} : vector<12x32xf32>, vector<32x256xf32>, vector<12x256xf32> -> vector<12x256xf32>
    %c0_12 = arith.constant 0 : index
    %c0_13 = arith.constant 0 : index
    %13 = vector.load %arg7[%c0_12, %c0_13] : memref<12x1xf32, #tpu.memory_space<vmem>>, vector<12x1xf32>
    %14 = vector.broadcast %13 : vector<12x1xf32> to vector<12x256xf32>
    %15 = arith.addf %12, %14 : vector<12x256xf32>
    %c0_14 = arith.constant 0 : index
    %c0_15 = arith.constant 0 : index
    %c0_16 = arith.constant 0 : index
    %16 = vector.load %arg10[%c0_14, %c0_15, %c0_16] : memref<1x3x256xf32, #tpu.memory_space<vmem>>, vector<1x3x256xf32>
    %17 = vector.shape_cast %16 : vector<1x3x256xf32> to vector<3x256xf32>
    %18 = vector.shape_cast %10 : vector<3x256xf32> to vector<1x3x256xf32>
    tpu.vector_store %arg10[%c0_14, %c0_15, %c0_16], %18 {strides = array<i32>} : memref<1x3x256xf32, #tpu.memory_space<vmem>>, vector<1x3x256xf32>,
    %c0_17 = arith.constant 0 : index
    %c0_18 = arith.constant 0 : index
    %c0_19 = arith.constant 0 : index
    %19 = vector.load %arg11[%c0_17, %c0_18, %c0_19] : memref<1x12x256xf32, #tpu.memory_space<vmem>>, vector<1x12x256xf32>
    %20 = vector.shape_cast %19 : vector<1x12x256xf32> to vector<12x256xf32>
    %21 = vector.shape_cast %15 : vector<12x256xf32> to vector<1x12x256xf32>
    tpu.vector_store %arg11[%c0_17, %c0_18, %c0_19], %21 {strides = array<i32>} : memref<1x12x256xf32, #tpu.memory_space<vmem>>, vector<1x12x256xf32>,
    %c0_20 = arith.constant 0 : index
    %c0_21 = arith.constant 0 : index
    %c0_22 = arith.constant 0 : index
    %22 = vector.load %arg12[%c0_20, %c0_21, %c0_22] : memref<1x12x256xf32, #tpu.memory_space<vmem>>, vector<1x12x256xf32>
    %23 = vector.shape_cast %22 : vector<1x12x256xf32> to vector<12x256xf32>
    %24 = vector.shape_cast %9 : vector<12x256xf32> to vector<1x12x256xf32>
    tpu.vector_store %arg12[%c0_20, %c0_21, %c0_22], %24 {strides = array<i32>} : memref<1x12x256xf32, #tpu.memory_space<vmem>>, vector<1x12x256xf32>,
    %25 = vector.extract_strided_slice %9 {offsets = [0, 0], sizes = [6, 256], strides = [1, 1]} : vector<12x256xf32> to vector<6x256xf32>
    %26 = vector.extract_strided_slice %9 {offsets = [6, 0], sizes = [6, 256], strides = [1, 1]} : vector<12x256xf32> to vector<6x256xf32>
    %27 = arith.negf %25 : vector<6x256xf32>
    %28 = math.exp %27 : vector<6x256xf32>
    %cst_23 = arith.constant 1.000000e+00 : f32
    %29 = vector.broadcast %cst_23 : f32 to vector<6x256xf32>
    %30 = arith.addf %29, %28 : vector<6x256xf32>
    %31 = arith.divf %29, %30 : vector<6x256xf32>
    %cst_24 = arith.constant 1.600000e+01 : f32
    %32 = vector.broadcast %cst_24 : f32 to vector<6x256xf32>
    %33 = arith.mulf %31, %32 : vector<6x256xf32>
    %c0_25 = arith.constant 0 : index
    %c0_26 = arith.constant 0 : index
    %34 = vector.load %arg8[%c0_25, %c0_26] : memref<6x256xf32, #tpu.memory_space<vmem>>, vector<6x256xf32>
    %35 = arith.addf %33, %34 : vector<6x256xf32>
    %36 = math.exp %26 : vector<6x256xf32>
    %c0_27 = arith.constant 0 : index
    %c0_28 = arith.constant 0 : index
    %37 = vector.load %arg9[%c0_27, %c0_28] : memref<6x1xf32, #tpu.memory_space<vmem>>, vector<6x1xf32>
    %38 = vector.broadcast %37 : vector<6x1xf32> to vector<6x256xf32>
    %39 = arith.mulf %36, %38 : vector<6x256xf32>
    %cst_29 = arith.constant 5.000000e-01 : f32
    %40 = vector.broadcast %cst_29 : f32 to vector<6x256xf32>
    %41 = arith.mulf %40, %39 : vector<6x256xf32>
    %42 = arith.subf %35, %41 : vector<6x256xf32>
    %43 = arith.addf %35, %41 : vector<6x256xf32>
    %44 = tpu.concatenate %42, %43 in 0 : vector<6x256xf32>, vector<6x256xf32> -> vector<12x256xf32>
    %c0_30 = arith.constant 0 : index
    %c0_31 = arith.constant 0 : index
    %c0_32 = arith.constant 0 : index
    %45 = vector.load %arg13[%c0_30, %c0_31, %c0_32] : memref<1x12x256xf32, #tpu.memory_space<vmem>>, vector<1x12x256xf32>
    %46 = vector.shape_cast %45 : vector<1x12x256xf32> to vector<12x256xf32>
    %47 = vector.shape_cast %44 : vector<12x256xf32> to vector<1x12x256xf32>
    tpu.vector_store %arg13[%c0_30, %c0_31, %c0_32], %47 {strides = array<i32>} : memref<1x12x256xf32, #tpu.memory_space<vmem>>, vector<1x12x256xf32>,
    return
  }
  func.func @transform_0(%arg0: i32, %arg1: i32) -> (i32, i32, i32) {
    %c0_i32 = arith.constant 0 : i32
    %c0_i32_0 = arith.constant 0 : i32
    return %arg1, %c0_i32, %arg0 : i32, i32, i32
  }
  func.func @transform_1(%arg0: i32, %arg1: i32) -> (i32, i32, i32) {
    %c0_i32 = arith.constant 0 : i32
    %c0_i32_0 = arith.constant 0 : i32
    return %arg1, %c0_i32, %arg0 : i32, i32, i32
  }
  func.func @transform_2(%arg0: i32, %arg1: i32) -> (i32, i32) {
    %c0_i32 = arith.constant 0 : i32
    %c0_i32_0 = arith.constant 0 : i32
    %c0_i32_1 = arith.constant 0 : i32
    return %c0_i32, %c0_i32_0 : i32, i32
  }
  func.func @transform_3(%arg0: i32, %arg1: i32) -> (i32, i32) {
    %c0_i32 = arith.constant 0 : i32
    %c0_i32_0 = arith.constant 0 : i32
    %c0_i32_1 = arith.constant 0 : i32
    return %c0_i32, %c0_i32_0 : i32, i32
  }
  func.func @transform_4(%arg0: i32, %arg1: i32) -> (i32, i32) {
    %c0_i32 = arith.constant 0 : i32
    %c0_i32_0 = arith.constant 0 : i32
    %c0_i32_1 = arith.constant 0 : i32
    return %c0_i32, %c0_i32_0 : i32, i32
  }
  func.func @transform_5(%arg0: i32, %arg1: i32) -> (i32, i32) {
    %c0_i32 = arith.constant 0 : i32
    %c0_i32_0 = arith.constant 0 : i32
    %c0_i32_1 = arith.constant 0 : i32
    return %c0_i32, %c0_i32_0 : i32, i32
  }
  func.func @transform_6(%arg0: i32, %arg1: i32) -> (i32, i32) {
    %c0_i32 = arith.constant 0 : i32
    %c0_i32_0 = arith.constant 0 : i32
    return %c0_i32, %arg0 : i32, i32
  }
  func.func @transform_7(%arg0: i32, %arg1: i32) -> (i32, i32) {
    %c0_i32 = arith.constant 0 : i32
    %c0_i32_0 = arith.constant 0 : i32
    %c0_i32_1 = arith.constant 0 : i32
    return %c0_i32, %c0_i32_0 : i32, i32
  }
  func.func @transform_8(%arg0: i32, %arg1: i32) -> (i32, i32, i32) {
    %c0_i32 = arith.constant 0 : i32
    %c0_i32_0 = arith.constant 0 : i32
    return %arg1, %c0_i32, %arg0 : i32, i32, i32
  }
  func.func @transform_9(%arg0: i32, %arg1: i32) -> (i32, i32, i32) {
    %c0_i32 = arith.constant 0 : i32
    %c0_i32_0 = arith.constant 0 : i32
    return %arg1, %c0_i32, %arg0 : i32, i32, i32
  }
  func.func @transform_10(%arg0: i32, %arg1: i32) -> (i32, i32, i32) {
    %c0_i32 = arith.constant 0 : i32
    %c0_i32_0 = arith.constant 0 : i32
    return %arg1, %c0_i32, %arg0 : i32, i32, i32
  }
  func.func @transform_11(%arg0: i32, %arg1: i32) -> (i32, i32, i32) {
    %c0_i32 = arith.constant 0 : i32
    %c0_i32_0 = arith.constant 0 : i32
    return %arg1, %c0_i32, %arg0 : i32, i32, i32
  }
}

</mosaic_0001>

<bundles_post_ra>
// kernel: tpu_custom_call.1
= control target key start
LH: loop header
LB: loop body
LE: loop exit
PB: predicated region body
PF: predicated region fallthrough
CT: control target
= control target key end

     0   :  { %s1656_s0 = inlined_call_operand.hbm [shape: f32[2,32,256], index: 0, kind: input, shape index: {}]   ;;  %s1657_s1 = inlined_call_operand.hbm [shape: f32[2,32,256], index: 1, kind: input, shape index: {}]   ;;  %s1658_s2 = inlined_call_operand.vmem [shape: f32[15,32], index: 2, kind: input, shape index: {}]   ;;  %s1659_s3 = inlined_call_operand.vmem [shape: f32[15,1], index: 3, kind: input, shape index: {}]   ;;  %s1660_s4 = inlined_call_operand.vmem [shape: f32[12,32], index: 4, kind: input, shape index: {}]   ;;  %s1661_s5 = inlined_call_operand.vmem [shape: f32[12,1], index: 5, kind: input, shape index: {}]   ;;  %s1662_s6 = inlined_call_operand.vmem [shape: f32[6,256], index: 6, kind: input, shape index: {}]   ;;  %s1663_s7 = inlined_call_operand.vmem [shape: f32[6,1], index: 7, kind: input, shape index: {}]   ;;  %s1664_s8 = inlined_call_operand.vmem [shape: f32[2,3,256], index: 8, kind: output, shape index: {0}]   ;;  %s1665_s9 = inlined_call_operand.vmem [shape: f32[2,12,256], index: 9, kind: output, shape index: {1}]   ;;  %s1666_s10 = inlined_call_operand.vmem [shape: f32[2,12,256], index: 10, kind: output, shape index: {2}]   ;;  %s1667_s11 = inlined_call_operand.vmem [shape: f32[2,12,256], index: 11, kind: output, shape index: {3}]  }
   0x1   :  { %1672 = sst [smem:[#allocation11_spill]] %s1656_s0 }
   0x2   :  { %1673 = sst [smem:[#allocation12_spill]] %s1662_s6 }
   0x3   :  { %1674 = sst [smem:[#allocation13_spill]] %s1667_s11 }
   0x4   :  { %17 = vsyncpa [#allocation3], 0 }
   0x5   :  { %19 = vsyncpa [#allocation3 + $0x1], 0 }
   0x6   :  { %20 = vsyncpa [#allocation5], 0 }
   0x7   :  { %22 = vsyncpa [#allocation5 + $0x1], 0  ;;  %s1449_s17 = smov 0   ;;  %s1451_s18 = smov 0  }
   0x8   :  { %s1453_s19 = smov 0   ;;  %s1455_s20 = smov 0  }
   0x9   :  { %s1457_s21 = smov 0   ;;  %s1459_s22 = smov 0  }
   0xa LB: > { %1675 = sst [smem:[#allocation8_spill]] %s1369_s19  ;;  %s1153_s23 = sadd.s32 4294967295, %s1381_s22   ;;  %s1381_s22 = sphi %s1459_s22, %s28_s22   ;;  %s1377_s21 = sphi %s1457_s21, %s1693_s21   ;;  %s1373_s20 = sphi %s1455_s20, %s1692_s20   ;;  %s1369_s19 = sphi %s1453_s19, %s1691_s19   ;;  %s1365_s18 = sphi %s1451_s18, %s1690_s18   ;;  %s1361_s17 = sphi %s1449_s17, %s1689_s17  }
   0xb   : > { %s37_s24 = sadd.s32 1, %s1377_s21  ;;  %s49_s25 = sadd.s32 1, %s1369_s19 }
   0xc   : > { %p38_p0 = scmp.ge.s32.totalorder %s37_s24, 2  ;;  %p56_p1 = scmp.ne.s32.totalorder %s1369_s19, %s1365_s18 }
   0xd   : > { %p57_p2 = scmp.eq.s32.totalorder %s1381_s22, 0  ;;  %p62_p4 = scmp.ne.s32.totalorder %s1365_s18, %s1361_s17 }
   0xe   : > { %s1695_s24 = smov (%p38_p0, %s37_s24), 0  ;;  %p63_p5 = scmp.eq.s32.totalorder %s1153_s23, 0 }
   0xf   : > { %1676 = sst [smem:[#allocation9_spill]] %s1695_s24  ;;  %p1485_p3 = por %p57_p2, %p56_p1 }
  0x10   : > { %s44_s27 = ssub.s32 %s1377_s21, %s1695_s24  ;;  %p1492_p7 = por %p63_p5, %p62_p4 }
  0x11   : > { %p47_p6 = scmp.eq.s32.totalorder %s44_s27, 0  ;;  %p1200_p8 = scmp.lt.s32.totalorder %s1381_s22, 2 }
  0x12   : > { %s1501_s30 = sand.u32 1, %s1369_s19   ;;  %s1669_s12 = sshll.u32 %s1377_s21, 10 }
  0x13   : > { %s1498_s29 = scalar_select %p47_p6, %s1369_s19, %s49_s25  }
  0x14   : > { %s1158_s13 = sshll.u32 %s1501_s30, 6  ;;  %s1680_s0 = sld [smem:[#allocation11_spill]] }
  0x15   : > { %1679 = sst [smem:[#allocation10_spill]] %s1498_s29  ;;  %s385_s17 = scalar_lea.vmem [#allocation2], %s1158_s13 }
  0x16   : > { %s394_s23 = sshll.u32 %s385_s17, 4  ;;  %p1512_p9 = pnand %p1200_p8, %p1485_p3  ;;  %s395_s23 = int_to_ptr.vmem [resolvable:$true] %s394_s23 }
  0x17   : > { %s382_s25 = scalar_lea.sflag [#allocation3], %s1501_s30  ;;  %s1284_s24 = scalar_lea.vmem %s395_s23, 1024 }
  0x18   : > { %p1273_p10 = pneg %p1512_p9  ;;  %p1285_p11 = scmp.ne.s32.totalorder %s395_s23, %s1284_s24 }
  0x19   : > { %s1383_s14 = smov [#allocation2]  }
  0x1a   : > { %s393_s16 = scalar_lea.hbm %s1680_s0, %s1669_s12  ;;  %p1287_p12 = pnand %p1285_p11, %p1273_p10 }
  0x1b   : > { %s1289_s15 = sshll.u32 %s1383_s14, 4  ;;  %s1290_s15 = int_to_ptr.vmem [resolvable:$false] %s1289_s15 }
  0x1c   : > { %p1288_p13 = pneg %p1287_p12  ;;  %s1291_s26 = scalar_lea.vmem %s1290_s15, 2048 }
  0x1d   : > { %p1292_p0 = scmp.lt.s32.totalorder %s395_s23, %s1290_s15  ;;  %p1293_p1 = scmp.lt.s32.totalorder %s1291_s26, %s1284_s24 }
  0x1f   : > { %p1294_p2 = por %p1293_p1, %p1292_p0 }
  0x21   : > { %p1295_p3 = pnand %p1294_p2, %p1288_p13 }
  0x23   : > { %1298 = shalt.err (!%p1295_p3)
}
  0x24   : > { %s1384_s17 = smov 256   ;;  %s1385_s12 = smov 16  }
  0x25   : > { %1196 = dma.hbm_to_vmem [thread:$0]  (!%p1512_p9), %s393_s16, 1024, %s395_s23, %s382_s25, %s1384_s17, %s1384_s17, %s1385_s12  }
  0x26   : > { %p1164_p4 = scmp.ge.s32.totalorder %s1381_s22, 1  ;;  %p425_p5 = scmp.lt.s32.totalorder %s1381_s22, 3 }
  0x27   : > { %s1683_s24 = sshll.u32 %s1377_s21, 10  ;;  %s408_s29 = scalar_lea.vmem [#allocation4], %s1158_s13 }
  0x28   : > { %p1526_p6 = pnand %p1164_p4, %p425_p5  ;;  %s416_s0 = scalar_lea.hbm %s1657_s1, %s1683_s24 }
  0x29   : > { %s417_s19 = sshll.u32 %s408_s29, 4  ;;  %s405_s11 = scalar_lea.sflag [#allocation5], %s1501_s30  ;;  %s418_s19 = int_to_ptr.vmem [resolvable:$true] %s417_s19 }
  0x2a   : > { %s1312_s6 = scalar_lea.vmem %s418_s19, 1024  ;;  %s1386_s16 = smov [#allocation4]  }
  0x2b   : > { %p1313_p8 = scmp.ne.s32.totalorder %s418_s19, %s1312_s6  ;;  %s1317_s23 = sshll.u32 %s1386_s16, 4  ;;  %s1318_s23 = int_to_ptr.vmem [resolvable:$false] %s1317_s23 }
  0x2c   : > { %s1319_s25 = scalar_lea.vmem %s1318_s23, 2048  ;;  %p1320_p13 = scmp.lt.s32.totalorder %s418_s19, %s1318_s23 }
  0x2d   : > { %p1315_p11 = pnand %p1313_p8, %p1273_p10  ;;  %p1321_p0 = scmp.lt.s32.totalorder %s1319_s25, %s1312_s6 }
  0x2f   : > { %p1316_p12 = pneg %p1315_p11  ;;  %p1322_p1 = por %p1321_p0, %p1320_p13 }
  0x31   : > { %p1323_p2 = pnand %p1322_p1, %p1316_p12 }
  0x33   : > { %1326 = shalt.err (!%p1323_p2)
}
  0x34   : > { %1199 = dma.hbm_to_vmem [thread:$0]  (!%p1512_p9), %s416_s0, 1024, %s418_s19, %s405_s11, %s1384_s17, %s1384_s17, %s1385_s12  }
  0x35   : > { %429 = sbr.rel (%p1526_p6) target bundleno = 311 (0x137), region = 52  ;;  %s431_s29 = sand.u32 (!%p1526_p6), 1, %s1365_s18  }
  0x36   : > { %s1165_s30 = sshll.u32 (!%p1526_p6), %s431_s29, 6  ;;  %s432_s13 = scalar_lea.sflag (!%p1526_p6), [#allocation3], %s431_s29 }
  0x37   : > { %s1544_s24 = scalar_lea.vmem (!%p1526_p6), [#allocation2], %s1165_s30 }
  0x3a   : > { %1352 = dma.done.wait (%p1492_p7), %s432_s13, 1024  }
  0x3b   : > { %1354 = vsyncadd (%p1492_p7), %s432_s13, 4294966272  ;;  %s441_s6 = scalar_lea.sflag [#allocation5], %s431_s29  ;;  %s1550_s15 = scalar_lea.vmem [#allocation4], %s1165_s30 }
  0x3c   : > { %1356 = dma.done.wait (%p1492_p7), %s441_s6, 1024  }
  0x3d   : > { %1358 = vsyncadd (%p1492_p7), %s441_s6, 4294966272  ;;  %v1387_v0 = vmov 0.0   ;;  %v1388_v1 = vmov 0   ;;  %v587_v2 = vld [vmem:[%s1550_s15 + $0x38] sm:$0xff]  ;;  %v586_v4 = vld [vmem:[%s1550_s15 + $0x30] sm:$0xff]  ;;  %vm602_vm0 = vcmask 261120  }
  0x3e   : > { %673 = vmatprep.mubr.f32.mxu0 %v1387_v0  ;;  %770 = vmatprep.mubr.f32.mxu1 %v1387_v0  ;;  %v579_v3 = vld [vmem:[%s1544_s24 + $0x38] sm:$0xff]  ;;  %v578_v5 = vld [vmem:[%s1544_s24 + $0x30] sm:$0xff]  ;;  %v585_v6 = vld [vmem:[%s1550_s15 + $0x28] sm:$0xff]  ;;  %p533_p7 = scmp.lt.s32.totalorder %s1373_s20, 1  ;;  %s1684_s29 = sld [smem:[#allocation12_spill]]  ;;  %vm841_vm1 = vcmask 1041408  }
  0x3f   : > { %1253 = vset.pattern.permute.xlu0 %v1388_v1  ;;  %1254 = vset.pattern.permute.xlu1 %v1388_v1  ;;  %v577_v7 = vld [vmem:[%s1544_s24 + $0x28] sm:$0xff]  ;;  %v584_v8 = vld [vmem:[%s1550_s15 + $0x20] sm:$0xff]  ;;  %v583_v10 = vld [vmem:[%s1550_s15 + $0x18] sm:$0xff]  ;;  %vm860_vm2 = vcmask 1045504  }
  0x40   : > { %633 = vmatprep.subr.mxu0 %v587_v2  ;;  %730 = vmatprep.subr.mxu1 %v579_v3  ;;  %v576_v9 = vld [vmem:[%s1544_s24 + $0x20] sm:$0xff]  ;;  %v575_v11 = vld [vmem:[%s1544_s24 + $0x18] sm:$0xff]  ;;  %v582_v12 = vld [vmem:[%s1550_s15 + $0x10] sm:$0xff]  ;;  %s1697_s20 = smov (!%p533_p7, %s1373_s20), 1 }
  0x41   : > { %634 = vmatpush1.msra.mxu0 %v586_v4  ;;  %731 = vmatpush1.msra.mxu1 %v578_v5  ;;  %v574_v13 = vld [vmem:[%s1544_s24 + $0x10] sm:$0xff]  ;;  %v581_v14 = vld [vmem:[%s1550_s15 + $0x8] sm:$0xff]  ;;  %v580_v16 = vld [vmem:[%s1550_s15] sm:$0xff]  ;;  %s1608_s0 = sshll.u32 %s1697_s20, 5  ;;  %s1185_s14 = sshll.u32 %s1697_s20, 3 }
  0x42   : > { %635 = vmatprep.subr.mxu0 %v585_v6  ;;  %732 = vmatprep.subr.mxu1 %v577_v7  ;;  %v573_v15 = vld [vmem:[%s1544_s24 + $0x8] sm:$0xff]  ;;  %v572_v17 = vld [vmem:[%s1544_s24] sm:$0xff]  ;;  %s1614_s28 = scalar_lea.vmem %s1666_s10, %s1608_s0  ;;  %s550_s17 = scalar_lea.vmem %s1665_s9, %s1608_s0 }
  0x43   : > { %636 = vmatpush1.msra.mxu0 %v584_v8  ;;  %733 = vmatpush1.msra.mxu1 %v576_v9  ;;  %v588_v18 = vld [vmem:[%s1658_s2] sm:$0xff]  ;;  %v589_v22 = vld [vmem:[%s1658_s2 + $0x8] sm:$0x7f]  ;;  %s540_s23 = scalar_lea.vmem %s1664_s8, %s1185_s14  ;;  %s1685_s15 = sld [smem:[#allocation13_spill]] }
  0x44   : > { %637 = vmatprep.subr.mxu0 %v583_v10  ;;  %734 = vmatprep.subr.mxu1 %v575_v11  ;;  %v686_v19 = vld [vmem:[%s1660_s4] sm:$0xff]  ;;  %v687_v23 = vld [vmem:[%s1660_s4 + $0x8] sm:$0xf] }
  0x45   : > { %638 = vmatpush1.msra.mxu0 %v582_v12  ;;  %735 = vmatpush1.msra.mxu1 %v574_v13  ;;  %v590_v20 = vld [vmem:[%s1659_s3] sm:$0xff]  ;;  %v591_v24 = vld [vmem:[%s1659_s3 + $0x8] sm:$0x7f] }
  0x46   : > { %639 = vmatprep.subr.mxu0 %v581_v14  ;;  %736 = vmatprep.subr.mxu1 %v573_v15  ;;  %v822_v21 = vld [vmem:[%s1663_s7] sm:$0x3f]  ;;  %v689_v26 = vld [vmem:[%s1661_s5 + $0x8] sm:$0xf] }
  0x47   : > { %640 = vmatpush1.msra.mxu0 %v580_v16  ;;  %737 = vmatpush1.msra.mxu1 %v572_v17  ;;  %v688_v25 = vld [vmem:[%s1661_s5] sm:$0xff]  ;;  %v811_v13 = vld [vmem:[%s1684_s29 + $0x8] sm:$0x3f] }
  0x48   : > { %1175 = vmatmul.mubr.msk.f32.vlgmr.msra.gmra.mxu0 %vm602_vm0, %v588_v18  ;;  %1177 = vmatmul.mubr.msk.f32.vlgmr.msra.gmra.mxu1 %vm602_vm0, %v686_v19  ;;  %v810_v8 = vld [vmem:[%s1684_s29] sm:$0x3f] }
  0x49   : > { %679 = vmatprep.mubr.f32.mxu0 %v1387_v0  ;;  %776 = vmatprep.mubr.f32.mxu1 %v1387_v0  ;;  %s570_s11 = scalar_lea.vmem %s1685_s15, %s1608_s0 }
  0x4a   : > { %594 = vperm.xlu0 %1253, %v590_v20   ;;  %825 = vperm.xlu1 %1254, %v822_v21  }
  0x4c   : > { %1176 = vmatmul.mubr.msk.f32.gmra.mxu0 %vm602_vm0, %v589_v22  ;;  %1178 = vmatmul.mubr.msk.f32.gmra.mxu1 %vm602_vm0, %v687_v23 }
  0x4e   : > { %599 = vperm.xlu0 %1253, %v591_v24   ;;  %692 = vperm.xlu1 %1254, %v688_v25  }
  0x52   : > { %697 = vperm.xlu0 %1253, %v689_v26  }
  0xc5   : > { %v595_v27 = vpop.permute.xlu0 %594  ;;  %v826_v28 = vpop.permute.xlu1 %825 }
  0xc6   : > { %v827_v61 = vrot.slane %v826_v28, 2 }
  0xc9   : > { %v693_v29 = vpop.permute.xlu1 %692  ;;  %v600_v30 = vpop.permute.xlu0 %599 }
  0xcd   : > { %v698_v42 = vpop.permute.xlu0 %697 }
 0x108   : > { %v675_v31 = vpop.f32.mrf.mxu0  ;;  %v772_v32 = vpop.f32.mrf.mxu1 }
 0x109   : > { %v676_v33 = vadd.f32 %v675_v31, %v595_v27  ;;  %v773_v34 = vadd.f32 %v772_v32, %v693_v29 }
 0x10a   : > { %v677_v35 = vpop.f32.mrf.mxu0  ;;  %v774_v36 = vpop.f32.mrf.mxu1 }
 0x10b   : > { %792 = vst [vmem:[%s1614_s28] sm:$0xff] %v676_v33  ;;  %v1179_v37 = vmul.f32 -1.442695, %v676_v33  ;;  %v678_v38 = vadd.f32 %v677_v35, %v595_v27  ;;  %v775_v39 = vadd.f32 %v774_v36, %v693_v29  ;;  %788 = vst [vmem:[%s550_s17] sm:$0xff] %v773_v34  ;;  %v814_v45 = vmul.f32 1.442695, %v676_v33 }
 0x10c   : > { %v681_v40 = vpop.f32.mrf.mxu0  ;;  %v778_v41 = vpop.f32.mrf.mxu1 }
 0x10d   : > { %1255 = vpow2.f32 %v1179_v37  ;;  %793 = vst [vmem:[%s1614_s28 + $0x8] sm:$0xff] %v678_v38  ;;  %v1180_v43 = vmul.f32 -1.442695, %v678_v38  ;;  %v682_v44 = vadd.f32 %v681_v40, %v600_v30  ;;  %789 = vst [vmem:[%s550_s17 + $0x8] sm:$0xff] %v775_v39  ;;  %v779_v46 = vadd.f32 %v778_v41, %v698_v42 }
 0x10e   : > { %v683_v47 = vpop.f32.mrf.mxu0  ;;  %v780_v48 = vpop.f32.mrf.mxu1  ;;  %v816_v54 = vmul.f32 1.442695, %v678_v38 }
 0x10f   : > { %1257 = vpow2.f32 %v1180_v43  ;;  %794 = vst [vmem:[%s1614_s28 + $0x10] sm:$0xf] %v682_v44  ;;  %v818_v49 = vmul.f32 1.442695, %v682_v44  ;;  %v684_v50 = vadd.f32 %v683_v47, %v600_v30  ;;  %v781_v51 = vadd.f32 %v780_v48, %v698_v42  ;;  %790 = vst [vmem:[%s550_s17 + $0x10] sm:$0xf] %v779_v46 }
 0x111   : > { %v785_v52 = vcombine.high %v682_v44, %v684_v50  ;;  %795 = vst [vmem:[%s1614_s28 + $0x18] sm:$0xf] %v684_v50  ;;  %v820_v53 = vmul.f32 1.442695, %v684_v50  ;;  %791 = vst [vmem:[%s550_s17 + $0x18] sm:$0xf] %v781_v51  ;;  %1259 = vpow2.f32 %v818_v49 }
 0x112   : > { %1261 = vpow2.f32 %v814_v45 }
 0x113   : > { %787 = vst [vmem:[%s540_s23] sm:$0x77] %v785_v52  ;;  %1263 = vpow2.f32 %v820_v53 }
 0x114   : > { %1265 = vpow2.f32 %v816_v54 }
 0x11a   : > { %v1256_v55 = vpop.eup %1255 }
 0x11b   : > { %v802_v56 = vadd.f32 1.0, %v1256_v55 }
 0x11c   : > { %v1258_v57 = vpop.eup %1257 }
 0x11d   : > { %1267 = vrcp.f32 %v802_v56  ;;  %v803_v58 = vadd.f32 1.0, %v1258_v57 }
 0x11e   : > { %v1260_v59 = vpop.eup %1259 }
 0x11f   : > { %1269 = vrcp.f32 %v803_v58  ;;  %v1262_v60 = vpop.eup %1261  ;;  %v831_v63 = vmul.f32 %v1260_v59, %v827_v61 }
 0x120   : > { %v1264_v62 = vpop.eup %1263  ;;  %v829_v1 = vmul.f32 %v1262_v60, %v827_v61 }
 0x121   : > { %v1266_v0 = vpop.eup %1265  ;;  %v832_v2 = vmul.f32 %v1264_v62, %v827_v61  ;;  %v835_v4 = vmul.f32 0.5, %v831_v63 }
 0x122   : > { %v830_v3 = vmul.f32 %v1266_v0, %v827_v61  ;;  %v833_v5 = vmul.f32 0.5, %v829_v1 }
 0x123   : > { %v836_v6 = vmul.f32 0.5, %v832_v2  ;;  %v843_v10 = vrot.slane %v835_v4, 6 }
 0x124   : > { %v834_v9 = vmul.f32 0.5, %v830_v3  ;;  %v842_v14 = vrot.slane %v833_v5, 6 }
 0x125   : > { %v846_v15 = vrot.slane %v836_v6, 6 }
 0x126   : > { %v844_v18 = vsel %vm841_vm1, %v842_v14, %v843_v10  ;;  %v845_v19 = vrot.slane %v834_v9, 6 }
 0x128   : > { %v847_v22 = vsel %vm841_vm1, %v845_v19, %v846_v15 }
 0x12a   : > { %v1268_v7 = vpop.eup %1267 }
 0x12b   : > { %v808_v11 = vmul.f32 16.0, %v1268_v7 }
 0x12c   : > { %v1270_v12 = vpop.eup %1269 }
 0x12d   : > { %v812_v16 = vadd.f32 %v810_v8, %v808_v11  ;;  %v809_v17 = vmul.f32 16.0, %v1270_v12 }
 0x12f   : > { %v813_v20 = vadd.f32 %v811_v13, %v809_v17  ;;  %v852_v21 = vadd.f32 %v844_v18, %v812_v16  ;;  %v850_v23 = vsub.f32 %v812_v16, %v844_v18 }
 0x131   : > { %v853_v24 = vadd.f32 %v847_v22, %v813_v20  ;;  %v856_v25 = vrot.slane %v852_v21, 2  ;;  %v851_v26 = vsub.f32 %v813_v20, %v847_v22 }
 0x133   : > { %v857_v27 = vrot.slane %v853_v24, 2  ;;  %v861_v28 = vsel %vm860_vm2, %v850_v23, %v856_v25  ;;  %865 = vst [vmem:[%s570_s11 + $0x10] sm:$0xf] %v856_v25 }
 0x134   : > { %863 = vst [vmem:[%s570_s11] sm:$0xff] %v861_v28 }
 0x135   : > { %v862_v29 = vsel %vm860_vm2, %v851_v26, %v857_v27  ;;  %866 = vst [vmem:[%s570_s11 + $0x18] sm:$0xf] %v857_v27 }
 0x136   : > { %864 = vst [vmem:[%s570_s11 + $0x8] sm:$0xff] %v862_v29 }
 0x137 PF: > { %s28_s22 = sadd.s32 1, %s1381_s22   ;;  %s1686_s19 = sld [smem:[#allocation8_spill]] }
 0x138   : > { %p25_p9 = scmp.ge.s32.totalorder %s28_s22, 4   ;;  %s1687_s0 = sld [smem:[#allocation10_spill]] }
 0x139   : > { %s1688_s28 = sld [smem:[#allocation9_spill]]  ;;  %s1689_s17 = smov %s1365_s18 }
 0x13a   : > { %s1692_s20 = smov %s1377_s21 }
 0x13b   :  { %27 = sbr.rel (!%p25_p9) target bundleno = 10 (0xa), region = 144 }
 0x13d   : > { %s1690_s18 = smov %s1686_s19 }
 0x13e   : > { %s1691_s19 = smov %s1687_s0 }
 0x13f   : > { %s1693_s21 = smov %s1688_s28 }
 0x140   :  { %972 = vsyncpa [#allocation3], 1 }
 0x141   :  { %974 = vsyncpa [#allocation3 + $0x1], 1 }
 0x142   :  { %975 = vsyncpa [#allocation5], 1 }
 0x143   :  { %977 = vsyncpa [#allocation5 + $0x1], 1 }

</bundles_post_ra>
